<compile_context>
chip_gen: v5e
topology: v5e:2x2
jax: 0.10.0
libtpu: 0.0.40
codegen_flags: <defaults>
</compile_context>

<pallas_src>
import jax
import jax.numpy as jnp
from jax.experimental import pallas as pl
from jax.experimental.pallas import tpu as pltpu


def _round_up(a: int, b: int) -> int:
    return ((a + b - 1) // b) * b


def net_x_kernel(xt_ref, slab_ref, o_ref):
    # Lane-dense [feature, N] layout, f32 throughout.
    xt = xt_ref[...]          # [x_dim, TN]   X^T tile
    slab = slab_ref[...]      # [width, 2*x_dim + 3] packed weight slab
    x_dim = xt.shape[0]

    # Unpack the slab (all static slices of an in-register value; zero cost).
    wil = slab[:, 0:x_dim]                            # [width, x_dim]  W_il
    wolt = slab[:, x_dim:2 * x_dim]                   # [width, x_dim]  W_ol.T
    m = slab[:, 2 * x_dim:2 * x_dim + 1]              # [width, 1] rowsum(W_il*W_ol.T)
    bil = slab[:, 2 * x_dim + 1:2 * x_dim + 2]        # [width, 1]  b_il
    bolc = slab[:, 2 * x_dim + 2:2 * x_dim + 3]       # [width, 1]  b_ol in rows 0..x_dim-1

    # Hidden pre-activation W_il @ X^T + b_il as x_dim broadcast FMAs on the
    # VPU (K = x_dim is far too small to be worth an MXU push/pop).
    z = wil[:, 0:1] * xt[0:1, :] + bil                # [width, TN]
    for d in range(1, x_dim):                         # static unroll
        z = z + wil[:, d:d + 1] * xt[d:d + 1, :]
    x1 = jax.nn.sigmoid(z)                            # [width, TN] (EUP)
    s = x1 * (1.0 - x1)                               # [width, TN]

    # Build the merged output [x_dim+1, TN]:
    #   rows 0..x_dim-1 : (W_ol @ x1 + b_ol)   — sublane reduces (XLU)
    #   row  x_dim      : m . (x1*(1-x1))       — trace term
    rows = []
    for d in range(x_dim):                            # static unroll, x_dim rows
        rows.append(
            jnp.sum(wolt[:, d:d + 1] * x1, axis=0, keepdims=True)
            + bolc[d:d + 1, :]
        )
    rows.append(jnp.sum(m * s, axis=0, keepdims=True))
    # Single dense (lane-full) store, one writeback DMA per grid step.
    o_ref[...] = jnp.concatenate(rows, axis=0)        # [x_dim+1, TN]


def net_x_forward(X, W_il, b_il, W_ol, b_ol, *, max_tile=2048):
    N, x_dim = X.shape
    width = W_il.shape[0]
    f32 = jnp.float32

    # --- weight-only prep, hoisted out of the kernel, packed into ONE slab ---
    wil = W_il.astype(f32)                                     # [width, x_dim]
    wolt = W_ol.T.astype(f32)                                  # [width, x_dim]
    m = jnp.sum(wil * wolt, axis=1, keepdims=True)             # [width, 1]
    bil = b_il.reshape(width, 1).astype(f32)                   # [width, 1]
    bolc = jnp.pad(b_ol.astype(f32).reshape(x_dim, 1),
                   ((0, width - x_dim), (0, 0)))               # [width, 1]
    slab = jnp.concatenate([wil, wolt, m, bil, bolc], axis=1)  # [width, 2*x_dim+3]
    n_cols = slab.shape[1]

    # --- batch in the lane axis; pick tile so small N => a single grid step ---
    n_pad = _round_up(max(N, 128), 128)
    if n_pad <= max_tile:
        tn = n_pad                        # grid=(1,) — overhead-minimal path
    else:
        tn = max_tile                     # large N: amortized tiles, shard on v7x
        n_pad = _round_up(n_pad, tn)
    grid = n_pad // tn

    xt = jnp.pad(X.T.astype(f32), ((0, 0), (0, n_pad - N)))    # [x_dim, n_pad]

    o = pl.pallas_call(
        net_x_kernel,
        out_shape=jax.ShapeDtypeStruct((x_dim + 1, n_pad), f32),
        grid=(grid,),
        in_specs=[
            pl.BlockSpec((x_dim, tn), lambda i: (0, i)),       # X^T lane tile
            pl.BlockSpec((width, n_cols), lambda i: (0, 0)),   # resident weight slab
        ],
        out_specs=pl.BlockSpec((x_dim + 1, tn), lambda i: (0, i)),  # merged out tile
        compiler_params=pltpu.CompilerParams(
            dimension_semantics=("parallel",),
        ),
    )(xt, slab)

    out1 = o[:x_dim, :N].T                                     # [N, x_dim]
    out2 = o[x_dim, :N]                                        # [N]
    return out1, out2


def net_x_reference(X, W_il, b_il, W_ol, b_ol):
    x1 = jax.nn.sigmoid(X @ W_il.T + b_il)
    out1 = x1 @ W_ol.T + b_ol
    x2 = (x1 * (1 - x1))[:, :, None]                           # [N, width, 1]
    mat = W_il * W_ol.T                                        # [width, x_dim]
    out2 = jnp.sum(x2 * mat[None, :, :], axis=(1, 2))          # [N]
    return out1, out2


if __name__ == "__main__":
    # Shapes implied by main.py: 2-D Gaussian input (x_dim=2), 200 samples.
    N, x_dim, width = 200, 2, 32

    key = jax.random.PRNGKey(0)
    k_x, k_w1, k_b1, k_w2, k_b2 = jax.random.split(key, 5)

    # Input samples (analogue of P0.sample: mean 0, cov 0.1*I)
    X = jnp.sqrt(0.1) * jax.random.normal(k_x, (N, x_dim), jnp.float32)

    # Deterministic init mimicking nn.Linear default U[-1/sqrt(fan_in), 1/sqrt(fan_in)]
    lim_il = 1.0 / jnp.sqrt(float(x_dim))
    lim_ol = 1.0 / jnp.sqrt(float(width))
    W_il = jax.random.uniform(k_w1, (width, x_dim), jnp.float32, -lim_il, lim_il)
    b_il = jax.random.uniform(k_b1, (width,), jnp.float32, -lim_il, lim_il)
    W_ol = jax.random.uniform(k_w2, (x_dim, width), jnp.float32, -lim_ol, lim_ol)
    b_ol = jax.random.uniform(k_b2, (x_dim,), jnp.float32, -lim_ol, lim_ol)

    out1, out2 = net_x_forward(X, W_il, b_il, W_ol, b_ol)
    jax.block_until_ready((out1, out2))

    ref1, ref2 = net_x_reference(X, W_il, b_il, W_ol, b_ol)
    assert out1.shape == (N, x_dim) and out2.shape == (N,)
    assert jnp.allclose(out1, ref1, atol=1e-5, rtol=1e-5)
    assert jnp.allclose(out2, ref2, atol=1e-5, rtol=1e-5)

    print("KERNEL_OK")
</pallas_src>

<mosaic_0001>
module attributes {stable_mosaic.version = 11 : i64} {
  func.func @net_x_kernel(%arg0: i32, %arg1: memref<2x256xf32, #tpu.memory_space<vmem>>, %arg2: memref<32x7xf32, #tpu.memory_space<vmem>>, %arg3: memref<3x256xf32, #tpu.memory_space<vmem>>) attributes {dimension_semantics = [#tpu.dimension_semantics<parallel>], iteration_bounds = array<i64: 1>, scalar_prefetch = 0 : i64, scratch_operands = 0 : i64, tpu.core_type = #tpu.core_type<tc>, window_params = [{transform_indices = @transform_0, window_bounds = array<i64: 2, 256>}, {pipeline_mode = #tpu.pipeline_mode<synchronous>, transform_indices = @transform_1, window_bounds = array<i64: 32, 7>}, {transform_indices = @transform_2, window_bounds = array<i64: 3, 256>}]} {
    %c0 = arith.constant 0 : index
    %c0_0 = arith.constant 0 : index
    %0 = vector.load %arg1[%c0, %c0_0] : memref<2x256xf32, #tpu.memory_space<vmem>>, vector<2x256xf32>
    %c0_1 = arith.constant 0 : index
    %c0_2 = arith.constant 0 : index
    %1 = vector.load %arg2[%c0_1, %c0_2] : memref<32x7xf32, #tpu.memory_space<vmem>>, vector<32x7xf32>
    %2 = vector.extract_strided_slice %1 {offsets = [0, 0], sizes = [32, 2], strides = [1, 1]} : vector<32x7xf32> to vector<32x2xf32>
    %3 = vector.extract_strided_slice %1 {offsets = [0, 2], sizes = [32, 2], strides = [1, 1]} : vector<32x7xf32> to vector<32x2xf32>
    %4 = vector.extract_strided_slice %1 {offsets = [0, 4], sizes = [32, 1], strides = [1, 1]} : vector<32x7xf32> to vector<32x1xf32>
    %5 = vector.extract_strided_slice %1 {offsets = [0, 5], sizes = [32, 1], strides = [1, 1]} : vector<32x7xf32> to vector<32x1xf32>
    %6 = vector.extract_strided_slice %1 {offsets = [0, 6], sizes = [32, 1], strides = [1, 1]} : vector<32x7xf32> to vector<32x1xf32>
    %7 = vector.extract_strided_slice %2 {offsets = [0, 0], sizes = [32, 1], strides = [1, 1]} : vector<32x2xf32> to vector<32x1xf32>
    %8 = vector.extract_strided_slice %0 {offsets = [0, 0], sizes = [1, 256], strides = [1, 1]} : vector<2x256xf32> to vector<1x256xf32>
    %9 = vector.broadcast %7 : vector<32x1xf32> to vector<32x256xf32>
    %10 = vector.broadcast %8 : vector<1x256xf32> to vector<32x256xf32>
    %11 = arith.mulf %9, %10 : vector<32x256xf32>
    %12 = vector.broadcast %5 : vector<32x1xf32> to vector<32x256xf32>
    %13 = arith.addf %11, %12 : vector<32x256xf32>
    %14 = vector.extract_strided_slice %2 {offsets = [0, 1], sizes = [32, 1], strides = [1, 1]} : vector<32x2xf32> to vector<32x1xf32>
    %15 = vector.extract_strided_slice %0 {offsets = [1, 0], sizes = [1, 256], strides = [1, 1]} : vector<2x256xf32> to vector<1x256xf32>
    %16 = vector.broadcast %14 : vector<32x1xf32> to vector<32x256xf32>
    %17 = vector.broadcast %15 : vector<1x256xf32> to vector<32x256xf32>
    %18 = arith.mulf %16, %17 : vector<32x256xf32>
    %19 = arith.addf %13, %18 : vector<32x256xf32>
    %20 = arith.negf %19 : vector<32x256xf32>
    %21 = math.exp %20 : vector<32x256xf32>
    %cst = arith.constant 1.000000e+00 : f32
    %22 = vector.broadcast %cst : f32 to vector<32x256xf32>
    %23 = arith.addf %22, %21 : vector<32x256xf32>
    %24 = arith.divf %22, %23 : vector<32x256xf32>
    %cst_3 = arith.constant 1.000000e+00 : f32
    %25 = vector.broadcast %cst_3 : f32 to vector<32x256xf32>
    %26 = arith.subf %25, %24 : vector<32x256xf32>
    %27 = arith.mulf %24, %26 : vector<32x256xf32>
    %28 = vector.extract_strided_slice %3 {offsets = [0, 0], sizes = [32, 1], strides = [1, 1]} : vector<32x2xf32> to vector<32x1xf32>
    %29 = vector.broadcast %28 : vector<32x1xf32> to vector<32x256xf32>
    %30 = arith.mulf %29, %24 : vector<32x256xf32>
    %cst_4 = arith.constant dense<0.000000e+00> : vector<256xf32>
    %31 = vector.multi_reduction <add>, %30, %cst_4 [0] : vector<32x256xf32> to vector<256xf32>
    %32 = vector.shape_cast %31 : vector<256xf32> to vector<1x256xf32>
    %33 = vector.extract_strided_slice %6 {offsets = [0, 0], sizes = [1, 1], strides = [1, 1]} : vector<32x1xf32> to vector<1x1xf32>
    %34 = vector.broadcast %33 : vector<1x1xf32> to vector<1x256xf32>
    %35 = arith.addf %32, %34 : vector<1x256xf32>
    %36 = vector.extract_strided_slice %3 {offsets = [0, 1], sizes = [32, 1], strides = [1, 1]} : vector<32x2xf32> to vector<32x1xf32>
    %37 = vector.broadcast %36 : vector<32x1xf32> to vector<32x256xf32>
    %38 = arith.mulf %37, %24 : vector<32x256xf32>
    %cst_5 = arith.constant dense<0.000000e+00> : vector<256xf32>
    %39 = vector.multi_reduction <add>, %38, %cst_5 [0] : vector<32x256xf32> to vector<256xf32>
    %40 = vector.shape_cast %39 : vector<256xf32> to vector<1x256xf32>
    %41 = vector.extract_strided_slice %6 {offsets = [1, 0], sizes = [1, 1], strides = [1, 1]} : vector<32x1xf32> to vector<1x1xf32>
    %42 = vector.broadcast %41 : vector<1x1xf32> to vector<1x256xf32>
    %43 = arith.addf %40, %42 : vector<1x256xf32>
    %44 = vector.broadcast %4 : vector<32x1xf32> to vector<32x256xf32>
    %45 = arith.mulf %44, %27 : vector<32x256xf32>
    %cst_6 = arith.constant dense<0.000000e+00> : vector<256xf32>
    %46 = vector.multi_reduction <add>, %45, %cst_6 [0] : vector<32x256xf32> to vector<256xf32>
    %47 = vector.shape_cast %46 : vector<256xf32> to vector<1x256xf32>
    %48 = tpu.concatenate %35, %43, %47 in 0 : vector<1x256xf32>, vector<1x256xf32>, vector<1x256xf32> -> vector<3x256xf32>
    %c0_7 = arith.constant 0 : index
    %c0_8 = arith.constant 0 : index
    %49 = vector.load %arg3[%c0_7, %c0_8] : memref<3x256xf32, #tpu.memory_space<vmem>>, vector<3x256xf32>
    tpu.vector_store %arg3[%c0_7, %c0_8], %48 {strides = array<i32>} : memref<3x256xf32, #tpu.memory_space<vmem>>, vector<3x256xf32>,
    return
  }
  func.func @transform_0(%arg0: i32) -> (i32, i32) {
    %c0_i32 = arith.constant 0 : i32
    %c0_i32_0 = arith.constant 0 : i32
    return %c0_i32, %arg0 : i32, i32
  }
  func.func @transform_1(%arg0: i32) -> (i32, i32) {
    %c0_i32 = arith.constant 0 : i32
    %c0_i32_0 = arith.constant 0 : i32
    %c0_i32_1 = arith.constant 0 : i32
    return %c0_i32, %c0_i32_0 : i32, i32
  }
  func.func @transform_2(%arg0: i32) -> (i32, i32) {
    %c0_i32 = arith.constant 0 : i32
    %c0_i32_0 = arith.constant 0 : i32
    return %c0_i32, %arg0 : i32, i32
  }
}

</mosaic_0001>

<bundles_post_ra>
// kernel: tpu_custom_call.1
= control target key start
LH: loop header
LB: loop body
LE: loop exit
PB: predicated region body
PF: predicated region fallthrough
CT: control target
= control target key end

     0   :  { %v539_v2 = vmov 0   ;;  %s754_s0 = inlined_call_operand.vmem [shape: f32[2,256], index: 0, kind: input, shape index: {}]   ;;  %s755_s1 = inlined_call_operand.vmem [shape: f32[32,7], index: 1, kind: input, shape index: {}]   ;;  %s756_s2 = inlined_call_operand.hbm [shape: f32[3,256], index: 2, kind: output, shape index: {}]  }
   0x1   :  { %v15_v0 = vld [vmem:[%s755_s1 + $0x10] sm:$0xff]  ;;  %v13_v1 = vld [vmem:[%s755_s1] sm:$0xff]  ;;  %462 = vset.pattern.permute.xlu1 %v539_v2  ;;  %461 = vset.pattern.permute.xlu0 %v539_v2 }
   0x2   :  { %7 = vsyncpa [#allocation3], 0  ;;  %29 = vperm.xlu1 %462, %v15_v0   ;;  %19 = vperm.xlu0 %461, %v13_v1   ;;  %v540_v3 = vmov 5   ;;  %v16_v4 = vld [vmem:[%s755_s1 + $0x18] sm:$0xff]  ;;  %v14_v5 = vld [vmem:[%s755_s1 + $0x8] sm:$0xff]  ;;  %v541_v6 = vmov 1  }
   0x3   :  { %463 = vset.pattern.permute.xlu2 %v540_v3  ;;  %v542_v7 = vmov 2   ;;  %v543_v8 = vmov 3   ;;  %v544_v9 = vmov 4   ;;  %v545_v10 = vmov 6   ;;  %v12_v13 = vld [vmem:[%s754_s0] sm:$0xf] }
   0x4   :  { %53 = vperm.xlu2 %463, %v13_v1   ;;  %v38_v14 = vperm.slane %v12_v13, 0  ;;  %v39_v15 = vperm.slane %v12_v13, 2  ;;  %v92_v16 = vperm.slane %v12_v13, 1  ;;  %v93_v17 = vperm.slane %v12_v13, 3  ;;  %s546_s0 = smov [#allocation2]   ;;  %s436_s21 = sshll.u32 %s756_s2, 4  ;;  %s437_s21 = int_to_ptr.hbm [resolvable:$true] %s436_s21 }
   0x5   :  { %s434_s18 = sshll.u32 %s546_s0, 4  ;;  %s435_s18 = int_to_ptr.vmem [resolvable:$true] %s434_s18 }
   0x6   :  { %v42_v18 = vperm.slane %v38_v14, 0  ;;  %v43_v19 = vperm.slane %v39_v15, 0  ;;  %v96_v20 = vperm.slane %v92_v16, 1  ;;  %v97_v21 = vperm.slane %v93_v17, 1 }
   0xa   :  { %34 = vperm.xlu1 %462, %v16_v4   ;;  %24 = vperm.xlu0 %461, %v14_v5  }
   0xc   :  { %57 = vperm.xlu2 %463, %v14_v5  }
  0x12   :  { %465 = vset.pattern.permute.xlu1 %v540_v3  ;;  %464 = vset.pattern.permute.xlu0 %v540_v3 }
  0x13   :  { %65 = vperm.xlu1 %465, %v16_v4   ;;  %61 = vperm.xlu0 %464, %v15_v0  }
  0x14   :  { %466 = vset.pattern.permute.xlu2 %v541_v6 }
  0x15   :  { %77 = vperm.xlu2 %466, %v13_v1  }
  0x1b   :  { %467 = vset.pattern.permute.xlu1 %v541_v6  ;;  %468 = vset.pattern.permute.xlu0 %v541_v6 }
  0x1c   :  { %81 = vperm.xlu1 %467, %v14_v5   ;;  %89 = vperm.xlu0 %468, %v16_v4  }
  0x1d   :  { %85 = vperm.xlu2 %466, %v15_v0  }
  0x24   :  { %469 = vset.pattern.permute.xlu1 %v542_v7  ;;  %473 = vset.pattern.permute.xlu0 %v542_v7 }
  0x25   :  { %283 = vperm.xlu1 %469, %v13_v1   ;;  %470 = vset.pattern.permute.xlu2 %v542_v7 }
  0x26   :  { %287 = vperm.xlu2 %470, %v14_v5   ;;  %291 = vperm.xlu0 %473, %v15_v0  }
  0x2d   :  { %471 = vset.pattern.permute.xlu1 %v543_v8 }
  0x2e   :  { %331 = vperm.xlu1 %471, %v13_v1   ;;  %472 = vset.pattern.permute.xlu2 %v543_v8 }
  0x2f   :  { %335 = vperm.xlu2 %472, %v14_v5   ;;  %477 = vset.pattern.permute.xlu0 %v543_v8 }
  0x30   :  { %343 = vperm.xlu0 %477, %v16_v4  }
  0x36   :  { %339 = vperm.xlu1 %471, %v15_v0  }
  0x37   :  { %474 = vset.pattern.permute.xlu2 %v544_v9 }
  0x38   :  { %375 = vperm.xlu2 %474, %v13_v1   ;;  %480 = vset.pattern.permute.xlu0 %v544_v9 }
  0x3e   :  { %475 = vset.pattern.permute.xlu1 %v544_v9 }
  0x3f   :  { %379 = vperm.xlu1 %475, %v14_v5  }
  0x40   :  { %476 = vset.pattern.permute.xlu2 %v542_v7 }
  0x41   :  { %295 = vperm.xlu2 %476, %v16_v4  }
  0x47   :  { %383 = vperm.xlu1 %475, %v15_v0  }
  0x49   :  { %478 = vset.pattern.permute.xlu2 %v544_v9 }
  0x4a   :  { %387 = vperm.xlu2 %478, %v16_v4  }
  0x4f   :  { %479 = vset.pattern.permute.xlu1 %v545_v10 }
  0x50   :  { %325 = vperm.xlu1 %479, %v13_v1  }
  0x5e   :  { %v54_v11 = vpop.permute.xlu2 %53 }
  0x66   :  { %v58_v12 = vpop.permute.xlu2 %57 }
  0x6f   :  { %v78_v22 = vpop.permute.xlu2 %77 }
  0x70   :  { %v98_v27 = vmul.f32 %v96_v20, %v78_v22  ;;  %v99_v28 = vmul.f32 %v97_v21, %v78_v22 }
  0x74   :  { %v30_v23 = vpop.permute.xlu1 %29  ;;  %v20_v24 = vpop.permute.xlu0 %19 }
  0x75   :  { %v44_v25 = vmul.f32 %v42_v18, %v20_v24  ;;  %v45_v26 = vmul.f32 %v43_v19, %v20_v24  ;;  %v48_v40 = vmul.f32 %v42_v18, %v30_v23  ;;  %v49_v43 = vmul.f32 %v43_v19, %v30_v23 }
  0x77   :  { %v68_v29 = vadd.f32 %v54_v11, %v44_v25  ;;  %v69_v30 = vadd.f32 %v54_v11, %v45_v26  ;;  %v86_v37 = vpop.permute.xlu2 %85 }
  0x78   :  { %v102_v42 = vmul.f32 %v96_v20, %v86_v37  ;;  %v103_v45 = vmul.f32 %v97_v21, %v86_v37 }
  0x79   :  { %v106_v31 = vadd.f32 %v98_v27, %v68_v29  ;;  %v107_v32 = vadd.f32 %v99_v28, %v69_v30 }
  0x7b   :  { %v445_v33 = vmul.f32 -1.442695, %v106_v31  ;;  %v446_v34 = vmul.f32 -1.442695, %v107_v32 }
  0x7c   :  { %v35_v35 = vpop.permute.xlu1 %34  ;;  %v25_v36 = vpop.permute.xlu0 %24 }
  0x7d   :  { %481 = vpow2.f32 %v445_v33  ;;  %v46_v50 = vmul.f32 %v42_v18, %v25_v36  ;;  %v47_v52 = vmul.f32 %v43_v19, %v25_v36  ;;  %v50_v56 = vmul.f32 %v42_v18, %v35_v35 }
  0x7e   :  { %483 = vpow2.f32 %v446_v34  ;;  %v51_v59 = vmul.f32 %v43_v19, %v35_v35 }
  0x7f   :  { %v70_v60 = vadd.f32 %v58_v12, %v46_v50  ;;  %v71_v62 = vadd.f32 %v58_v12, %v47_v52 }
  0x80   :  { %v583_v55 = vpop.permute.xlu2 %287 }
  0x83   :  { %v482_v38 = vpop.eup %481 }
  0x84   :  { %v484_v39 = vpop.eup %483  ;;  %v577_v41 = vadd.f32 1.0, %v482_v38 }
  0x85   :  { %v579_v44 = vadd.f32 1.0, %v484_v39  ;;  %v66_v46 = vpop.permute.xlu1 %65  ;;  %v62_v47 = vpop.permute.xlu0 %61 }
  0x86   :  { %485 = vrcp.f32 %v577_v41  ;;  %v72_v48 = vadd.f32 %v62_v47, %v48_v40  ;;  %v73_v49 = vadd.f32 %v62_v47, %v49_v43  ;;  %v74_v63 = vadd.f32 %v66_v46, %v50_v56 }
  0x87   :  { %487 = vrcp.f32 %v579_v44  ;;  %v75_v1 = vadd.f32 %v66_v46, %v51_v59  ;;  %vm151_vm0 = vweird.f32 %v577_v41  ;;  %v155_v4 = vand.u32 2147483647, %v577_v41 }
  0x88   :  { %v110_v51 = vadd.f32 %v102_v42, %v72_v48  ;;  %v111_v53 = vadd.f32 %v103_v45, %v73_v49  ;;  %v157_v11 = vand.u32 2147483648, %v577_v41  ;;  %vm166_vm1 = vweird.f32 %v579_v44 }
  0x89   :  { %v172_v16 = vand.u32 2147483648, %v579_v44  ;;  %v597_v27 = vpop.permute.xlu2 %335  ;;  %vm156_vm4 = vcmp.eq.f32.partialorder %v155_v4, 8.507059e+37 }
  0x8a   :  { %v449_v54 = vmul.f32 -1.442695, %v110_v51  ;;  %v450_v57 = vmul.f32 -1.442695, %v111_v53  ;;  %v158_v30 = vor.u32 1.1754944e-38, %v157_v11 }
  0x8b   :  { %v173_v34 = vor.u32 1.1754944e-38, %v172_v16 }
  0x8c   :  { %v486_v58 = vpop.eup %485  ;;  %489 = vpow2.f32 %v449_v54 }
  0x8d   :  { %v488_v61 = vpop.eup %487  ;;  %491 = vpow2.f32 %v450_v57  ;;  %v147_v0 = vmul.f32 %v486_v58, %v577_v41  ;;  %vm152_vm2 = vweird.f32 %v486_v58 }
  0x8e   :  { %v82_v2 = vpop.permute.xlu1 %81  ;;  %v90_v3 = vpop.permute.xlu0 %89  ;;  %v162_v5 = vmul.f32 %v488_v61, %v579_v44  ;;  %vm167_vm3 = vweird.f32 %v488_v61  ;;  %vm153_vm5 = vmor %vm151_vm0, %vm152_vm2 }
  0x8f   :  { %v100_v6 = vmul.f32 %v96_v20, %v82_v2  ;;  %v101_v7 = vmul.f32 %v97_v21, %v82_v2  ;;  %v104_v8 = vmul.f32 %v96_v20, %v90_v3  ;;  %v105_v9 = vmul.f32 %v97_v21, %v90_v3  ;;  %vm168_vm6 = vmor %vm166_vm1, %vm167_vm3 }
  0x90   :  { %v148_v10 = vsub.f32 1.0, %v147_v0  ;;  %v163_v12 = vsub.f32 1.0, %v162_v5  ;;  %v170_v21 = vand.u32 2147483647, %v579_v44 }
  0x91   :  { %v108_v13 = vadd.f32 %v100_v6, %v70_v60  ;;  %v109_v14 = vadd.f32 %v101_v7, %v71_v62  ;;  %v112_v15 = vadd.f32 %v104_v8, %v74_v63  ;;  %v113_v18 = vadd.f32 %v105_v9, %v75_v1 }
  0x92   :  { %v490_v17 = vpop.eup %489  ;;  %v149_v19 = vmul.f32 %v486_v58, %v148_v10  ;;  %v164_v22 = vmul.f32 %v488_v61, %v163_v12  ;;  %vm171_vm7 = vcmp.eq.f32.partialorder %v170_v21, 8.507059e+37  ;;  %v376_v52 = vpop.permute.xlu2 %375 }
  0x93   :  { %v492_v23 = vpop.eup %491  ;;  %v592_v24 = vadd.f32 1.0, %v490_v17  ;;  %v447_v20 = vmul.f32 -1.442695, %v108_v13  ;;  %v448_v26 = vmul.f32 -1.442695, %v109_v14 }
  0x94   :  { %v595_v25 = vadd.f32 1.0, %v492_v23  ;;  %v150_v28 = vadd.f32 %v486_v58, %v149_v19  ;;  %v451_v29 = vmul.f32 -1.442695, %v112_v15  ;;  %v165_v31 = vadd.f32 %v488_v61, %v164_v22 }
  0x95   :  { %493 = vrcp.f32 %v592_v24  ;;  %v452_v32 = vmul.f32 -1.442695, %v113_v18  ;;  %v217_v42 = vand.u32 2147483648, %v592_v24  ;;  %v215_v45 = vand.u32 2147483647, %v592_v24 }
  0x96   :  { %495 = vrcp.f32 %v595_v25  ;;  %v154_v33 = vsel %vm153_vm5, %v486_v58, %v150_v28  ;;  %v169_v37 = vsel %vm168_vm6, %v488_v61, %v165_v31  ;;  %vm211_vm8 = vweird.f32 %v592_v24 }
  0x97   :  { %497 = vpow2.f32 %v447_v20  ;;  %v284_v35 = vpop.permute.xlu1 %283  ;;  %v159_v36 = vsel %vm156_vm4, %v158_v30, %v154_v33  ;;  %v174_v38 = vsel %vm171_vm7, %v173_v34, %v169_v37  ;;  %vm226_vm9 = vweird.f32 %v595_v25 }
  0x98   :  { %499 = vpow2.f32 %v448_v26  ;;  %v266_v39 = vsub.f32 1.0, %v159_v36  ;;  %v267_v40 = vsub.f32 1.0, %v174_v38  ;;  %v619_v51 = vmul.f32 %v284_v35, %v159_v36  ;;  %v292_v18 = vpop.permute.xlu0 %291 }
  0x99   :  { %501 = vpow2.f32 %v451_v29  ;;  %v230_v54 = vand.u32 2147483647, %v595_v25  ;;  %v625_v58 = vmul.f32 %v284_v35, %v174_v38  ;;  %v218_v59 = vor.u32 1.1754944e-38, %v217_v42 }
  0x9a   :  { %503 = vpow2.f32 %v452_v32  ;;  %v274_v47 = vmul.f32 %v266_v39, %v159_v36  ;;  %v275_v53 = vmul.f32 %v267_v40, %v174_v38  ;;  %v232_v60 = vand.u32 2147483648, %v595_v25 }
  0x9b   :  { %v606_v41 = vpop.eup %493  ;;  %vm631_vm10 = vcmp.eq.f32.partialorder %v215_v45, 8.507059e+37  ;;  %vm645_vm12 = vcmp.eq.f32.partialorder %v230_v54, 8.507059e+37 }
  0x9c   :  { %v609_v43 = vpop.eup %495  ;;  %v207_v44 = vmul.f32 %v606_v41, %v592_v24  ;;  %v639_v5 = vmul.f32 %v376_v52, %v274_v47  ;;  %v642_v6 = vmul.f32 %v376_v52, %v275_v53  ;;  %vm212_vm11 = vweird.f32 %v606_v41 }
  0x9d   :  { %v498_v46 = vpop.eup %497  ;;  %v222_v48 = vmul.f32 %v609_v43, %v595_v25  ;;  %vm227_vm13 = vweird.f32 %v609_v43  ;;  %v233_v13 = vor.u32 1.1754944e-38, %v232_v60  ;;  %vm667_vm0 = vmor %vm211_vm8, %vm212_vm11 }
  0x9e   :  { %v500_v49 = vpop.eup %499  ;;  %v617_v50 = vadd.f32 1.0, %v498_v46  ;;  %v208_v0 = vsub.f32 1.0, %v207_v44  ;;  %vm228_vm2 = vmor %vm226_vm9, %vm227_vm13 }
  0x9f   :  { %v502_v56 = vpop.eup %501  ;;  %v623_v57 = vadd.f32 1.0, %v500_v49  ;;  %v223_v2 = vsub.f32 1.0, %v222_v48 }
  0xa0   :  { %v504_v61 = vpop.eup %503  ;;  %505 = vrcp.f32 %v617_v50  ;;  %v629_v62 = vadd.f32 1.0, %v502_v56  ;;  %v332_v63 = vpop.permute.xlu1 %331  ;;  %v187_v4 = vand.u32 2147483648, %v617_v50  ;;  %v185_v8 = vand.u32 2147483647, %v617_v50 }
  0xa1   :  { %507 = vrcp.f32 %v623_v57  ;;  %v636_v3 = vadd.f32 1.0, %v504_v61  ;;  %v202_v9 = vand.u32 2147483648, %v623_v57  ;;  %v200_v10 = vand.u32 2147483647, %v623_v57 }
  0xa2   :  { %509 = vrcp.f32 %v629_v62  ;;  %v209_v11 = vmul.f32 %v606_v41, %v208_v0  ;;  %v224_v12 = vmul.f32 %v609_v43, %v223_v2  ;;  %vm181_vm14 = vweird.f32 %v617_v50 }
  0xa3   :  { %511 = vrcp.f32 %v636_v3  ;;  %v188_v14 = vor.u32 1.1754944e-38, %v187_v4  ;;  %v657_v15 = vmul.f32 %v332_v63, %v159_v36  ;;  %v659_v16 = vmul.f32 %v332_v63, %v174_v38 }
  0xa4   :  { %vm196_vm15 = vweird.f32 %v623_v57  ;;  %v210_v19 = vadd.f32 %v606_v41, %v209_v11  ;;  %v225_v23 = vadd.f32 %v609_v43, %v224_v12  ;;  %v245_v20 = vand.u32 2147483647, %v629_v62 }
  0xa5   :  { %v247_v21 = vand.u32 2147483648, %v629_v62  ;;  %vm675_vm1 = vcmp.eq.f32.partialorder %v185_v8, 8.507059e+37  ;;  %v203_v30 = vor.u32 1.1754944e-38, %v202_v9  ;;  %vm241_vm3 = vweird.f32 %v629_v62  ;;  %v344_v9 = vpop.permute.xlu0 %343 }
  0xa6   :  { %v506_v17 = vpop.eup %505  ;;  %v260_v24 = vand.u32 2147483647, %v636_v3  ;;  %vm686_vm4 = vcmp.eq.f32.partialorder %v200_v10, 8.507059e+37  ;;  %v214_v34 = vsel %vm667_vm0, %v606_v41, %v210_v19  ;;  %v229_v35 = vsel %vm228_vm2, %v609_v43, %v225_v23  ;;  %v296_v19 = vpop.permute.xlu2 %295 }
  0xa7   :  { %v508_v26 = vpop.eup %507  ;;  %v177_v28 = vmul.f32 %v506_v17, %v617_v50  ;;  %v262_v25 = vand.u32 2147483648, %v636_v3  ;;  %v697_v39 = vsel %vm631_vm10, %v218_v59, %v214_v34  ;;  %v701_v40 = vsel %vm645_vm12, %v233_v13, %v229_v35 }
  0xa8   :  { %v510_v31 = vpop.eup %509  ;;  %v192_v32 = vmul.f32 %v508_v26, %v623_v57  ;;  %v340_v36 = vpop.permute.xlu1 %339  ;;  %vm182_vm5 = vweird.f32 %v506_v17  ;;  %vm704_vm6 = vcmp.eq.f32.partialorder %v245_v20, 8.507059e+37  ;;  %v248_v43 = vor.u32 1.1754944e-38, %v247_v21 }
  0xa9   :  { %v512_v37 = vpop.eup %511  ;;  %v178_v38 = vsub.f32 1.0, %v177_v28  ;;  %v237_v42 = vmul.f32 %v510_v31, %v629_v62  ;;  %vm256_vm7 = vweird.f32 %v636_v3  ;;  %vm197_vm8 = vweird.f32 %v508_v26  ;;  %vm183_vm10 = vmor %vm181_vm14, %vm182_vm5 }
  0xaa   :  { %v193_v44 = vsub.f32 1.0, %v192_v32  ;;  %v302_v46 = vmul.f32 %v292_v18, %v697_v39  ;;  %v303_v49 = vmul.f32 %v292_v18, %v701_v40  ;;  %v350_v52 = vmul.f32 %v340_v36, %v697_v39  ;;  %vm198_vm13 = vmor %vm196_vm15, %vm197_vm8 }
  0xab   :  { %v179_v45 = vmul.f32 %v506_v17, %v178_v38  ;;  %v238_v47 = vsub.f32 1.0, %v237_v42  ;;  %v252_v53 = vmul.f32 %v512_v37, %v636_v3  ;;  %v351_v56 = vmul.f32 %v340_v36, %v701_v40 }
  0xac   :  { %v194_v48 = vmul.f32 %v508_v26, %v193_v44  ;;  %vm242_vm9 = vweird.f32 %v510_v31  ;;  %vm257_vm11 = vweird.f32 %v512_v37  ;;  %vm717_vm12 = vcmp.eq.f32.partialorder %v260_v24, 8.507059e+37 }
  0xad   :  { %v180_v54 = vadd.f32 %v506_v17, %v179_v45  ;;  %v239_v59 = vmul.f32 %v510_v31, %v238_v47  ;;  %v253_v61 = vsub.f32 1.0, %v252_v53  ;;  %v263_v2 = vor.u32 1.1754944e-38, %v262_v25  ;;  %vm243_vm14 = vmor %vm241_vm3, %vm242_vm9 }
  0xae   :  { %v195_v60 = vadd.f32 %v508_v26, %v194_v48  ;;  %v270_v4 = vsub.f32 1.0, %v697_v39  ;;  %v271_v10 = vsub.f32 1.0, %v701_v40  ;;  %vm258_vm15 = vmor %vm256_vm7, %vm257_vm11  ;;  %vm416_vm0 = vcmask 1040384  }
  0xaf   :  { %v184_v0 = vsel %vm183_vm10, %v506_v17, %v180_v54  ;;  %v240_v1 = vadd.f32 %v510_v31, %v239_v59  ;;  %v254_v8 = vmul.f32 %v512_v37, %v253_v61  ;;  %vm425_vm2 = vcmask 1043456  }
  0xb0   :  { %v189_v50 = vsel %vm675_vm1, %v188_v14, %v184_v0  ;;  %v199_v7 = vsel %vm198_vm13, %v508_v26, %v195_v60  ;;  %v278_v48 = vmul.f32 %v270_v4, %v697_v39  ;;  %v388_v0 = vpop.permute.xlu2 %387  ;;  %vm419_vm1 = vcmask 1041408  }
  0xb1   :  { %v204_v11 = vsel %vm686_vm4, %v203_v30, %v199_v7  ;;  %v348_v57 = vmul.f32 %v597_v27, %v189_v50  ;;  %v300_v12 = vmul.f32 %v583_v55, %v189_v50  ;;  %v244_v13 = vsel %vm243_vm14, %v510_v31, %v240_v1  ;;  %v380_v17 = vpop.permute.xlu1 %379 }
  0xb2   :  { %v349_v18 = vmul.f32 %v597_v27, %v204_v11  ;;  %v301_v14 = vmul.f32 %v583_v55, %v204_v11  ;;  %v249_v62 = vsel %vm704_vm6, %v248_v43, %v244_v13  ;;  %v255_v22 = vadd.f32 %v512_v37, %v254_v8 }
  0xb3   :  { %v306_v23 = vadd.f32 %v300_v12, %v619_v51  ;;  %v354_v20 = vadd.f32 %v348_v57, %v657_v15  ;;  %v304_v21 = vmul.f32 %v296_v19, %v249_v62  ;;  %v352_v26 = vmul.f32 %v344_v9, %v249_v62 }
  0xb4   :  { %v315_v28 = vadd.f32 %v301_v14, %v625_v58  ;;  %v363_v27 = vadd.f32 %v349_v18, %v659_v16  ;;  %v259_v55 = vsel %vm258_vm15, %v512_v37, %v255_v22  ;;  %v268_v29 = vsub.f32 1.0, %v189_v50 }
  0xb5   :  { %v307_v30 = vadd.f32 %v306_v23, %v302_v46  ;;  %v355_v24 = vadd.f32 %v354_v20, %v350_v52  ;;  %v264_v31 = vsel %vm717_vm12, %v263_v2, %v259_v55  ;;  %v269_v51 = vsub.f32 1.0, %v204_v11 }
  0xb6   :  { %v316_v32 = vadd.f32 %v315_v28, %v303_v49  ;;  %v364_v15 = vadd.f32 %v363_v27, %v351_v56  ;;  %v305_v33 = vmul.f32 %v296_v19, %v264_v31  ;;  %v353_v34 = vmul.f32 %v344_v9, %v264_v31 }
  0xb7   :  { %v308_v3 = vadd.f32 %v307_v30, %v304_v21  ;;  %v356_v35 = vadd.f32 %v355_v24, %v352_v26  ;;  %v276_v36 = vmul.f32 %v268_v29, %v189_v50  ;;  %v277_v25 = vmul.f32 %v269_v51, %v204_v11 }
  0xb8   :  { %v317_v38 = vadd.f32 %v316_v32, %v305_v33  ;;  %v365_v58 = vadd.f32 %v364_v15, %v353_v34  ;;  %v272_v42 = vsub.f32 1.0, %v249_v62  ;;  %v273_v16 = vsub.f32 1.0, %v264_v31 }
  0xb9   :  { %v309_v37 = vrot.slane %v308_v3, 4  ;;  %v357_v44 = vrot.slane %v356_v35, 4  ;;  %v392_v41 = vmul.f32 %v380_v17, %v276_v36  ;;  %v393_v43 = vmul.f32 %v380_v17, %v277_v25  ;;  %v384_v47 = vpop.permute.xlu1 %383 }
  0xba   :  { %v318_v45 = vrot.slane %v317_v38, 4  ;;  %v366_v46 = vrot.slane %v365_v58, 4  ;;  %v279_v49 = vmul.f32 %v271_v10, %v701_v40  ;;  %v280_v54 = vmul.f32 %v272_v42, %v249_v62 }
  0xbb   :  { %v310_v52 = vadd.f32 %v309_v37, %v308_v3  ;;  %v358_v53 = vadd.f32 %v357_v44, %v356_v35  ;;  %v281_v56 = vmul.f32 %v273_v16, %v264_v31  ;;  %v398_v61 = vadd.f32 %v392_v41, %v639_v5 }
  0xbc   :  { %v319_v59 = vadd.f32 %v318_v45, %v317_v38  ;;  %v367_v60 = vadd.f32 %v366_v46, %v365_v58  ;;  %v407_v63 = vadd.f32 %v393_v43, %v642_v6  ;;  %v394_v50 = vmul.f32 %v384_v47, %v278_v48 }
  0xbd   :  { %v311_v1 = vrot.slane %v310_v52, 2  ;;  %v359_v2 = vrot.slane %v358_v53, 2  ;;  %v395_v7 = vmul.f32 %v384_v47, %v279_v49  ;;  %v396_v39 = vmul.f32 %v388_v0, %v280_v54 }
  0xbe   :  { %v320_v8 = vrot.slane %v319_v59, 2  ;;  %v368_v9 = vrot.slane %v367_v60, 2  ;;  %v397_v4 = vmul.f32 %v388_v0, %v281_v56  ;;  %v399_v40 = vadd.f32 %v398_v61, %v394_v50 }
  0xbf   :  { %v408_v10 = vadd.f32 %v407_v63, %v395_v7  ;;  %v360_v11 = vadd.f32 %v359_v2, %v358_v53  ;;  %v312_v12 = vadd.f32 %v311_v1, %v310_v52 }
  0xc0   :  { %v369_v57 = vadd.f32 %v368_v9, %v367_v60  ;;  %v321_v13 = vadd.f32 %v320_v8, %v319_v59  ;;  %v400_v17 = vadd.f32 %v399_v40, %v396_v39 }
  0xc1   :  { %v409_v18 = vadd.f32 %v408_v10, %v397_v4  ;;  %v313_v62 = vrot.slane %v312_v12, 1  ;;  %v361_v22 = vrot.slane %v360_v11, 1 }
  0xc2   :  { %v322_v5 = vrot.slane %v321_v13, 1  ;;  %v370_v14 = vrot.slane %v369_v57, 1  ;;  %v401_v6 = vrot.slane %v400_v17, 4  ;;  %v326_v55 = vpop.permute.xlu1 %325 }
  0xc3   :  { %v410_v19 = vrot.slane %v409_v18, 4  ;;  %v314_v29 = vadd.f32 %v313_v62, %v312_v12  ;;  %v362_v30 = vadd.f32 %v361_v22, %v360_v11 }
  0xc4   :  { %v402_v23 = vadd.f32 %v401_v6, %v400_v17  ;;  %v323_v21 = vadd.f32 %v322_v5, %v321_v13  ;;  %v371_v26 = vadd.f32 %v370_v14, %v369_v57 }
  0xc5   :  { %v411_v20 = vadd.f32 %v410_v19, %v409_v18  ;;  %v328_v34 = vadd.f32 %v326_v55, %v314_v29  ;;  %v372_v3 = vadd.f32 %v362_v30, %v326_v55 }
  0xc6   :  { %v403_v28 = vrot.slane %v402_v23, 2  ;;  %v329_v51 = vadd.f32 %v326_v55, %v323_v21  ;;  %v373_v32 = vadd.f32 %v371_v26, %v326_v55 }
  0xc7   :  { %v412_v27 = vrot.slane %v411_v20, 2  ;;  %v417_v58 = vsel %vm416_vm0, %v328_v34, %v372_v3 }
  0xc8   :  { %v404_v24 = vadd.f32 %v403_v28, %v402_v23  ;;  %v418_v25 = vsel %vm416_vm0, %v329_v51, %v373_v32 }
  0xc9   :  { %v413_v31 = vadd.f32 %v412_v27, %v411_v20 }
  0xca   :  { %v405_v15 = vrot.slane %v404_v24, 1 }
  0xcb   :  { %v414_v33 = vrot.slane %v413_v31, 1 }
  0xcc   :  { %v406_v36 = vadd.f32 %v405_v15, %v404_v24 }
  0xcd   :  { %v415_v35 = vadd.f32 %v414_v33, %v413_v31 }
  0xce   :  { %v420_v16 = vsel %vm419_vm1, %v417_v58, %v406_v36 }
  0xcf   :  { %v421_v38 = vsel %vm419_vm1, %v418_v25, %v415_v35 }
  0xd0   :  { %v424_v42 = vrot.slane %v421_v38, 4 }
  0xd2   :  { %v426_v37 = vsel %vm425_vm2, %v420_v16, %v424_v42 }
  0xd3   :  { %428 = vst [vmem:[#allocation2] sm:$0x77] %v426_v37 }
  0xd4   :  { %439 = dma.vmem_to_hbm [thread:$0]  %s435_s18, 128, %s437_s21, [#allocation3]  }
  0xd5   :  { %537 = dma.done.wait [#allocation3], 128  }
  0xd6   :  { %538 = vsyncadd [#allocation3], 4294967168 }
  0xd7   :  { %444 = vsyncpa [#allocation3], 1 }

</bundles_post_ra>
